<compile_context>
chip_gen: v6e
topology: v6e:2x2x1
jax: 0.10.0
libtpu: 0.0.40
codegen_flags: <defaults>
</compile_context>

<pallas_src>
import math

import jax
import jax.numpy as jnp
from jax.experimental import pallas as pl
from jax.experimental.pallas import tpu as pltpu

# --- module hyper-parameters (small, consistent with the MLP forward) -------
I_FEATURES = 64    # e.g. a flattened 1x8x8 input image
H_FEATURES = 32
O_FEATURES = 16

FOLD = 8                        # batch rows folded into the 128-lane dim
IF = I_FEATURES * FOLD          # 512  (lane-dense layer-1 K)
HF = H_FEATURES * FOLD          # 256  (lane-dense hidden width)
OF = O_FEATURES * FOLD          # 128  (lane-dense output width)


def _mlp_kernel(x_ref, w1_ref, b1_ref, w2_ref, b2_ref, out_ref):
    """Fused 2-layer MLP on one lane-folded batch tile.

    x_ref:  (tbf, 512)   -- 8 batch rows folded per folded row
    w1_ref: (512, 256)   -- blockdiag(8 x W1.T), possibly bf16
    b1_ref: (1, 256)     -- b1 tiled 8x, f32
    w2_ref: (256, 128)   -- blockdiag(8 x W2.T), f32
    b2_ref: (1, 128)     -- b2 tiled 8x, f32
    out_ref:(tbf, 128)
    """
    # layer 1: Linear(I -> H) with f32 accumulation on the MXU
    h = jnp.dot(x_ref[...], w1_ref[...], preferred_element_type=jnp.float32)
    # bias + ReLU epilogue kept in f32 (v5e VPU has no bf16 ALU; keeps the
    # f32 layer-1 accumulator intact for layer 2).
    h = jnp.maximum(h + b1_ref[...], 0.0)
    # layer 2: Linear(H -> O), f32 all the way
    o = jnp.dot(h, w2_ref[...], preferred_element_type=jnp.float32)
    out_ref[...] = (o + b2_ref[...]).astype(out_ref.dtype)


def mlp_forward(x, w1, b1, w2, b2, *, block_b=32768, cast_inputs_to_bf16=False):
    """Pallas wrapper. x: any shape whose trailing dims flatten to I_FEATURES.

    Weights follow the PyTorch nn.Linear convention W[out, in]; they are
    transposed + block-diagonalized once here so the kernel never relayouts.
    block_b is counted in *unfolded* batch rows and must be a multiple of 64.
    """
    assert block_b % (FOLD * 8) == 0, "block_b must be a multiple of 64"
    out_dtype = x.dtype

    x2d = x.reshape(-1, I_FEATURES)                 # torch: x.view(-1, i_features)
    batch = x2d.shape[0]

    # Align batch to FOLD*8 = 64 rows so the folded view has multiple-of-8
    # sublane rows.  Pad is at most 63 rows; no padding at all when
    # batch % 64 == 0 (the old pad-to-tile full-array copy is gone).
    # TODO(synk): a tiny tail pallas_call would avoid even this copy for huge
    # non-aligned batches.
    batch_al = -(-batch // (FOLD * 8)) * (FOLD * 8)
    if batch_al != batch:
        x2d = jnp.pad(x2d, ((0, batch_al - batch), (0, 0)))

    bf = batch_al // FOLD                           # folded batch rows (mult of 8)
    xf = x2d.reshape(bf, IF)                        # free contiguous lane-fold

    # folded tile rows: as large as block_b allows, never larger than bf.
    tbf = min(block_b // FOLD, bf)                  # multiple of 8
    grid = (pl.cdiv(bf, tbf),)                      # ragged last block allowed

    # one-time HBM-side weight prep (hoisted out of the kernel):
    w1_blk = jnp.kron(jnp.eye(FOLD, dtype=w1.dtype), w1.T)   # (512, 256)
    w2_blk = jnp.kron(jnp.eye(FOLD, dtype=w2.dtype), w2.T)   # (256, 128)
    b1_blk = jnp.tile(b1, FOLD).reshape(1, HF)               # (1, 256)
    b2_blk = jnp.tile(b2, FOLD).reshape(1, OF)               # (1, 128)

    if cast_inputs_to_bf16:
        # Halves the dominant HBM read (x) on v6e/v7x; accumulation stays f32
        # and layer 2 / epilogue stay entirely f32.
        xf = xf.astype(jnp.bfloat16)
        w1_blk = w1_blk.astype(jnp.bfloat16)

    out_f = pl.pallas_call(
        _mlp_kernel,
        out_shape=jax.ShapeDtypeStruct((bf, OF), out_dtype),
        grid_spec=pltpu.PrefetchScalarGridSpec(
            num_scalar_prefetch=0,
            grid=grid,
            in_specs=[
                # activations: tiled along the batch grid axis, lane-dense
                pl.BlockSpec((tbf, IF), lambda i: (i, 0)),
                # weights / biases: constant index -> resident in VMEM
                pl.BlockSpec((IF, HF), lambda i: (0, 0)),
                pl.BlockSpec((1, HF), lambda i: (0, 0)),
                pl.BlockSpec((HF, OF), lambda i: (0, 0)),
                pl.BlockSpec((1, OF), lambda i: (0, 0)),
            ],
            out_specs=pl.BlockSpec((tbf, OF), lambda i: (i, 0)),
        ),
        compiler_params=pltpu.CompilerParams(
            # batch tiles are independent -> shard across TCs on v7x
            dimension_semantics=("parallel",),
            # ~21 MiB used at the default tile; 48 MiB is safe on v5e/v6e
            # (128 MiB physical) and within v7x's 64 MiB physical VMEM.
            vmem_limit_bytes=48 << 20,
        ),
    )(xf, w1_blk, b1_blk, w2_blk, b2_blk)

    # unfold lanes back to (batch, O) -- free contiguous reshape -- and drop pad
    return out_f.reshape(batch_al, O_FEATURES)[:batch]


def init_params(key):
    """Deterministic init matching nn.Linear shapes (W: [out, in], b: [out])."""
    k1, k2, k3, k4 = jax.random.split(key, 4)
    bound1 = 1.0 / math.sqrt(I_FEATURES)
    bound2 = 1.0 / math.sqrt(H_FEATURES)
    w1 = jax.random.uniform(k1, (H_FEATURES, I_FEATURES), jnp.float32,
                            minval=-bound1, maxval=bound1)
    b1 = jax.random.uniform(k2, (H_FEATURES,), jnp.float32,
                            minval=-bound1, maxval=bound1)
    w2 = jax.random.uniform(k3, (O_FEATURES, H_FEATURES), jnp.float32,
                            minval=-bound2, maxval=bound2)
    b2 = jax.random.uniform(k4, (O_FEATURES,), jnp.float32,
                            minval=-bound2, maxval=bound2)
    return w1, b1, w2, b2


def _reference(x, w1, b1, w2, b2):
    x2d = x.reshape(-1, I_FEATURES)
    return jnp.maximum(x2d @ w1.T + b1, 0.0) @ w2.T + b2


if __name__ == "__main__":
    key = jax.random.PRNGKey(0)
    kx, kx2, kp = jax.random.split(key, 3)
    w1, b1, w2, b2 = init_params(kp)

    # 1) small "image batch": (8, 1, 8, 8) -> flattens to (8, 64); single tile
    x = jax.random.normal(kx, (8, 1, 8, 8), jnp.float32)
    out = jax.block_until_ready(mlp_forward(x, w1, b1, w2, b2))
    ref = _reference(x, w1, b1, w2, b2)
    assert out.shape == (8, O_FEATURES)
    assert jnp.allclose(out, ref, atol=1e-5, rtol=1e-5)

    # 2) multi-tile grid with a ragged last block:
    #    batch=200 -> padded to 256 -> 32 folded rows, tile=24 folded rows
    x_big = jax.random.normal(kx2, (200, 1, 8, 8), jnp.float32)
    out_big = jax.block_until_ready(
        mlp_forward(x_big, w1, b1, w2, b2, block_b=192))
    ref_big = _reference(x_big, w1, b1, w2, b2)
    assert out_big.shape == (200, O_FEATURES)
    assert jnp.allclose(out_big, ref_big, atol=1e-5, rtol=1e-5)

    # 3) optional bf16 input path (HBM-read halving on v6e/v7x); looser tol
    out_bf16 = jax.block_until_ready(
        mlp_forward(x_big, w1, b1, w2, b2, cast_inputs_to_bf16=True))
    assert out_bf16.shape == (200, O_FEATURES)
    assert jnp.allclose(out_bf16, ref_big, atol=1e-1, rtol=1e-1)

    print("KERNEL_OK")
</pallas_src>

<mosaic_0001>
module attributes {stable_mosaic.version = 11 : i64} {
  func.func @_mlp_kernel(%arg0: i32, %arg1: memref<8x512xf32, #tpu.memory_space<vmem>>, %arg2: memref<512x256xf32, #tpu.memory_space<vmem>>, %arg3: memref<1x256xf32, #tpu.memory_space<vmem>>, %arg4: memref<256x128xf32, #tpu.memory_space<vmem>>, %arg5: memref<1x128xf32, #tpu.memory_space<vmem>>, %arg6: memref<8x128xf32, #tpu.memory_space<vmem>>) attributes {dimension_semantics = [#tpu.dimension_semantics<parallel>], iteration_bounds = array<i64: 1>, scalar_prefetch = 0 : i64, scratch_operands = 0 : i64, tpu.core_type = #tpu.core_type<tc>, window_params = [{transform_indices = @transform_0, window_bounds = array<i64: 8, 512>}, {pipeline_mode = #tpu.pipeline_mode<synchronous>, transform_indices = @transform_1, window_bounds = array<i64: 512, 256>}, {pipeline_mode = #tpu.pipeline_mode<synchronous>, transform_indices = @transform_2, window_bounds = array<i64: 1, 256>}, {pipeline_mode = #tpu.pipeline_mode<synchronous>, transform_indices = @transform_3, window_bounds = array<i64: 256, 128>}, {pipeline_mode = #tpu.pipeline_mode<synchronous>, transform_indices = @transform_4, window_bounds = array<i64: 1, 128>}, {transform_indices = @transform_5, window_bounds = array<i64: 8, 128>}]} {
    %c0 = arith.constant 0 : index
    %c0_0 = arith.constant 0 : index
    %0 = vector.load %arg1[%c0, %c0_0] : memref<8x512xf32, #tpu.memory_space<vmem>>, vector<8x512xf32>
    %c0_1 = arith.constant 0 : index
    %c0_2 = arith.constant 0 : index
    %1 = vector.load %arg2[%c0_1, %c0_2] : memref<512x256xf32, #tpu.memory_space<vmem>>, vector<512x256xf32>
    %cst = arith.constant dense<0.000000e+00> : vector<8x256xf32>
    %2 = tpu.matmul %0, %1, %cst {dimension_numbers = #tpu.dot_dimension_numbers<[1], [0], [0], [1], [0, 0, 1, 1], [], []>} : vector<8x512xf32>, vector<512x256xf32>, vector<8x256xf32> -> vector<8x256xf32>
    %c0_3 = arith.constant 0 : index
    %c0_4 = arith.constant 0 : index
    %3 = vector.load %arg3[%c0_3, %c0_4] : memref<1x256xf32, #tpu.memory_space<vmem>>, vector<1x256xf32>
    %4 = vector.broadcast %3 : vector<1x256xf32> to vector<8x256xf32>
    %5 = arith.addf %2, %4 : vector<8x256xf32>
    %cst_5 = arith.constant 0.000000e+00 : f32
    %6 = vector.broadcast %cst_5 : f32 to vector<8x256xf32>
    %7 = arith.maximumf %5, %6 : vector<8x256xf32>
    %c0_6 = arith.constant 0 : index
    %c0_7 = arith.constant 0 : index
    %8 = vector.load %arg4[%c0_6, %c0_7] : memref<256x128xf32, #tpu.memory_space<vmem>>, vector<256x128xf32>
    %cst_8 = arith.constant dense<0.000000e+00> : vector<8x128xf32>
    %9 = tpu.matmul %7, %8, %cst_8 {dimension_numbers = #tpu.dot_dimension_numbers<[1], [0], [0], [1], [0, 0, 1, 1], [], []>} : vector<8x256xf32>, vector<256x128xf32>, vector<8x128xf32> -> vector<8x128xf32>
    %c0_9 = arith.constant 0 : index
    %c0_10 = arith.constant 0 : index
    %10 = vector.load %arg5[%c0_9, %c0_10] : memref<1x128xf32, #tpu.memory_space<vmem>>, vector<1x128xf32>
    %11 = vector.broadcast %10 : vector<1x128xf32> to vector<8x128xf32>
    %12 = arith.addf %9, %11 : vector<8x128xf32>
    %c0_11 = arith.constant 0 : index
    %c0_12 = arith.constant 0 : index
    %13 = vector.load %arg6[%c0_11, %c0_12] : memref<8x128xf32, #tpu.memory_space<vmem>>, vector<8x128xf32>
    tpu.vector_store %arg6[%c0_11, %c0_12], %12 {strides = array<i32>} : memref<8x128xf32, #tpu.memory_space<vmem>>, vector<8x128xf32>,
    return
  }
  func.func @transform_0(%arg0: i32) -> (i32, i32) {
    %c0_i32 = arith.constant 0 : i32
    %c0_i32_0 = arith.constant 0 : i32
    return %arg0, %c0_i32 : i32, i32
  }
  func.func @transform_1(%arg0: i32) -> (i32, i32) {
    %c0_i32 = arith.constant 0 : i32
    %c0_i32_0 = arith.constant 0 : i32
    %c0_i32_1 = arith.constant 0 : i32
    return %c0_i32, %c0_i32_0 : i32, i32
  }
  func.func @transform_2(%arg0: i32) -> (i32, i32) {
    %c0_i32 = arith.constant 0 : i32
    %c0_i32_0 = arith.constant 0 : i32
    %c0_i32_1 = arith.constant 0 : i32
    return %c0_i32, %c0_i32_0 : i32, i32
  }
  func.func @transform_3(%arg0: i32) -> (i32, i32) {
    %c0_i32 = arith.constant 0 : i32
    %c0_i32_0 = arith.constant 0 : i32
    %c0_i32_1 = arith.constant 0 : i32
    return %c0_i32, %c0_i32_0 : i32, i32
  }
  func.func @transform_4(%arg0: i32) -> (i32, i32) {
    %c0_i32 = arith.constant 0 : i32
    %c0_i32_0 = arith.constant 0 : i32
    %c0_i32_1 = arith.constant 0 : i32
    return %c0_i32, %c0_i32_0 : i32, i32
  }
  func.func @transform_5(%arg0: i32) -> (i32, i32) {
    %c0_i32 = arith.constant 0 : i32
    %c0_i32_0 = arith.constant 0 : i32
    return %arg0, %c0_i32 : i32, i32
  }
}

</mosaic_0001>

<bundles_post_ra>
// kernel: tpu_custom_call.1
= control target key start
LH: loop header
LB: loop body
LE: loop exit
PB: predicated region body
PF: predicated region fallthrough
CT: control target
= control target key end

     0   :  { %10 = vsyncpa [#allocation3], 0  ;;  %s660_s0 = inlined_call_operand.hbm [shape: f32[8,512], index: 0, kind: input, shape index: {}]   ;;  %s661_s1 = inlined_call_operand.hbm [shape: f32[512,256], index: 1, kind: input, shape index: {}]   ;;  %s662_s2 = inlined_call_operand.vmem [shape: f32[1,256], index: 2, kind: input, shape index: {}]   ;;  %s663_s3 = inlined_call_operand.hbm [shape: f32[256,128], index: 3, kind: input, shape index: {}]   ;;  %s664_s4 = inlined_call_operand.vmem [shape: f32[1,128], index: 4, kind: input, shape index: {}]   ;;  %s665_s5 = inlined_call_operand.hbm [shape: f32[8,128], index: 5, kind: output, shape index: {}]  }
   0x1   :  { %11 = vsyncpa [#allocation6], 0 }
   0x2   :  { %12 = vsyncpa [#allocation4], 0  ;;  %s604_s18 = smov [#allocation5]  }
   0x3   :  { %s28_s19 = sshll.u32 %s604_s18, 4  ;;  %s29_s19 = int_to_ptr.vmem [resolvable:$true] %s28_s19 }
   0x4   :  { %s526_s20 = scalar_lea.vmem %s29_s19, 16384  ;;  %p531_p1 = scmp.lt.s32.totalorder %s29_s19, %s29_s19 }
   0x5   :  { %p527_p0 = scmp.ne.s32.totalorder %s29_s19, %s526_s20  ;;  %p532_p2 = scmp.lt.s32.totalorder %s526_s20, %s526_s20 }
   0x7   :  { %p533_p3 = por %p532_p2, %p531_p1 }
   0x9   :  { %p534_p4 = pnand %p533_p3, %p527_p0 }
   0xb   :  { %537 = shalt.err (!%p534_p4)
}
   0xc   :  { %s605_s21 = smov 256   ;;  %s606_s22 = smov 16  }
   0xd   :  { %34 = dma.hbm_to_vmem [thread:$0]  %s661_s1, 16384, %s29_s19, [#allocation6], %s605_s21, %s605_s21, %s606_s22  }
   0xe   :  { %s607_s25 = smov [#allocation2]   ;;  %s608_s27 = smov [#allocation7]  }
   0xf   :  { %s19_s26 = sshll.u32 %s607_s25, 4  ;;  %s42_s28 = sshll.u32 %s608_s27, 4  ;;  %s20_s26 = int_to_ptr.vmem [resolvable:$true] %s19_s26  ;;  %s43_s28 = int_to_ptr.vmem [resolvable:$true] %s42_s28 }
  0x10   :  { %s546_s29 = scalar_lea.vmem %s20_s26, 512  ;;  %p551_p6 = scmp.lt.s32.totalorder %s20_s26, %s20_s26 }
  0x11   :  { %p547_p5 = scmp.ne.s32.totalorder %s20_s26, %s546_s29  ;;  %p552_p7 = scmp.lt.s32.totalorder %s546_s29, %s546_s29 }
  0x13   :  { %p553_p8 = por %p552_p7, %p551_p6 }
  0x15   :  { %p554_p9 = pnand %p553_p8, %p547_p5 }
  0x17   :  { %557 = shalt.err (!%p554_p9)
}
  0x18   :  { %22 = dma.hbm_to_vmem [thread:$0]  %s660_s0, 512, %s20_s26, [#allocation3]  }
  0x19   :  { %s566_s7 = scalar_lea.vmem %s43_s28, 4096  ;;  %p571_p11 = scmp.lt.s32.totalorder %s43_s28, %s43_s28 }
  0x1a   :  { %p567_p10 = scmp.ne.s32.totalorder %s43_s28, %s566_s7  ;;  %p572_p12 = scmp.lt.s32.totalorder %s566_s7, %s566_s7 }
  0x1c   :  { %p573_p13 = por %p572_p12, %p571_p11 }
  0x1e   :  { %p574_p0 = pnand %p573_p13, %p567_p10 }
  0x20   :  { %577 = shalt.err (!%p574_p0)
}
  0x21   :  { %s609_s1 = smov 128   ;;  %s610_s8 = smov 8  }
  0x22   :  { %48 = dma.hbm_to_vmem [thread:$0]  %s663_s3, 4096, %s43_s28, [#allocation6], %s609_s1, %s609_s1, %s610_s8  }
  0x23   :  { %598 = dma.done.wait [#allocation3], 512  }
  0x24   :  { %599 = vsyncadd [#allocation3], 4294966784 }
  0x25   :  { %600 = dma.done.wait [#allocation6], 20480  }
  0x26   :  { %601 = vsyncadd [#allocation6], 4294946816  ;;  %v95_v0 = vld [vmem:[#allocation5 + $0xf8] sm:$0xff]  ;;  %v94_v2 = vld [vmem:[#allocation5 + $0xf0] sm:$0xff] }
  0x27   :  { %v159_v1 = vld [vmem:[#allocation5 + $0x2f8] sm:$0xff]  ;;  %204 = vmatprep.subr.mxu0 %v95_v0  ;;  %v158_v3 = vld [vmem:[#allocation5 + $0x2f0] sm:$0xff]  ;;  %v93_v4 = vld [vmem:[#allocation5 + $0xe8] sm:$0xff] }
  0x28   :  { %275 = vmatprep.subr.mxu1 %v159_v1  ;;  %v157_v5 = vld [vmem:[#allocation5 + $0x2e8] sm:$0xff]  ;;  %205 = vmatpush1.msra.mxu0 %v94_v2  ;;  %v92_v6 = vld [vmem:[#allocation5 + $0xe0] sm:$0xff]  ;;  %v91_v8 = vld [vmem:[#allocation5 + $0xd8] sm:$0xff] }
  0x29   :  { %276 = vmatpush1.msra.mxu1 %v158_v3  ;;  %v156_v7 = vld [vmem:[#allocation5 + $0x2e0] sm:$0xff]  ;;  %206 = vmatprep.subr.mxu0 %v93_v4  ;;  %v155_v9 = vld [vmem:[#allocation5 + $0x2d8] sm:$0xff]  ;;  %v90_v10 = vld [vmem:[#allocation5 + $0xd0] sm:$0xff] }
  0x2a   :  { %277 = vmatprep.subr.mxu1 %v157_v5  ;;  %v154_v11 = vld [vmem:[#allocation5 + $0x2d0] sm:$0xff]  ;;  %207 = vmatpush1.msra.mxu0 %v92_v6  ;;  %v89_v12 = vld [vmem:[#allocation5 + $0xc8] sm:$0xff]  ;;  %v88_v14 = vld [vmem:[#allocation5 + $0xc0] sm:$0xff] }
  0x2b   :  { %278 = vmatpush1.msra.mxu1 %v156_v7  ;;  %v153_v13 = vld [vmem:[#allocation5 + $0x2c8] sm:$0xff]  ;;  %208 = vmatprep.subr.mxu0 %v91_v8  ;;  %v152_v15 = vld [vmem:[#allocation5 + $0x2c0] sm:$0xff]  ;;  %v87_v16 = vld [vmem:[#allocation5 + $0xb8] sm:$0xff] }
  0x2c   :  { %279 = vmatprep.subr.mxu1 %v155_v9  ;;  %209 = vmatpush1.msra.mxu0 %v90_v10  ;;  %v151_v17 = vld [vmem:[#allocation5 + $0x2b8] sm:$0xff]  ;;  %v86_v18 = vld [vmem:[#allocation5 + $0xb0] sm:$0xff]  ;;  %v85_v20 = vld [vmem:[#allocation5 + $0xa8] sm:$0xff] }
  0x2d   :  { %280 = vmatpush1.msra.mxu1 %v154_v11  ;;  %210 = vmatprep.subr.mxu0 %v89_v12  ;;  %v150_v19 = vld [vmem:[#allocation5 + $0x2b0] sm:$0xff]  ;;  %v149_v21 = vld [vmem:[#allocation5 + $0x2a8] sm:$0xff]  ;;  %v84_v22 = vld [vmem:[#allocation5 + $0xa0] sm:$0xff] }
  0x2e   :  { %281 = vmatprep.subr.mxu1 %v153_v13  ;;  %211 = vmatpush1.msra.mxu0 %v88_v14  ;;  %v148_v23 = vld [vmem:[#allocation5 + $0x2a0] sm:$0xff]  ;;  %v83_v24 = vld [vmem:[#allocation5 + $0x98] sm:$0xff]  ;;  %v82_v26 = vld [vmem:[#allocation5 + $0x90] sm:$0xff] }
  0x2f   :  { %282 = vmatpush1.msra.mxu1 %v152_v15  ;;  %212 = vmatprep.subr.mxu0 %v87_v16  ;;  %v147_v25 = vld [vmem:[#allocation5 + $0x298] sm:$0xff]  ;;  %v146_v27 = vld [vmem:[#allocation5 + $0x290] sm:$0xff]  ;;  %v81_v28 = vld [vmem:[#allocation5 + $0x88] sm:$0xff] }
  0x30   :  { %283 = vmatprep.subr.mxu1 %v151_v17  ;;  %213 = vmatpush1.msra.mxu0 %v86_v18  ;;  %v145_v29 = vld [vmem:[#allocation5 + $0x288] sm:$0xff]  ;;  %v80_v30 = vld [vmem:[#allocation5 + $0x80] sm:$0xff]  ;;  %v79_v32 = vld [vmem:[#allocation5 + $0x78] sm:$0xff] }
  0x31   :  { %284 = vmatpush1.msra.mxu1 %v150_v19  ;;  %214 = vmatprep.subr.mxu0 %v85_v20  ;;  %v144_v31 = vld [vmem:[#allocation5 + $0x280] sm:$0xff]  ;;  %v143_v33 = vld [vmem:[#allocation5 + $0x278] sm:$0xff]  ;;  %v78_v34 = vld [vmem:[#allocation5 + $0x70] sm:$0xff] }
  0x32   :  { %285 = vmatprep.subr.mxu1 %v149_v21  ;;  %215 = vmatpush1.msra.mxu0 %v84_v22  ;;  %v142_v35 = vld [vmem:[#allocation5 + $0x270] sm:$0xff]  ;;  %v77_v36 = vld [vmem:[#allocation5 + $0x68] sm:$0xff]  ;;  %v76_v38 = vld [vmem:[#allocation5 + $0x60] sm:$0xff] }
  0x33   :  { %286 = vmatpush1.msra.mxu1 %v148_v23  ;;  %216 = vmatprep.subr.mxu0 %v83_v24  ;;  %v141_v37 = vld [vmem:[#allocation5 + $0x268] sm:$0xff]  ;;  %v140_v39 = vld [vmem:[#allocation5 + $0x260] sm:$0xff]  ;;  %v75_v40 = vld [vmem:[#allocation5 + $0x58] sm:$0xff] }
  0x34   :  { %287 = vmatprep.subr.mxu1 %v147_v25  ;;  %217 = vmatpush1.msra.mxu0 %v82_v26  ;;  %v139_v41 = vld [vmem:[#allocation5 + $0x258] sm:$0xff]  ;;  %v74_v42 = vld [vmem:[#allocation5 + $0x50] sm:$0xff]  ;;  %v73_v44 = vld [vmem:[#allocation5 + $0x48] sm:$0xff] }
  0x35   :  { %288 = vmatpush1.msra.mxu1 %v146_v27  ;;  %218 = vmatprep.subr.mxu0 %v81_v28  ;;  %v138_v43 = vld [vmem:[#allocation5 + $0x250] sm:$0xff]  ;;  %v137_v45 = vld [vmem:[#allocation5 + $0x248] sm:$0xff]  ;;  %v72_v46 = vld [vmem:[#allocation5 + $0x40] sm:$0xff] }
  0x36   :  { %289 = vmatprep.subr.mxu1 %v145_v29  ;;  %219 = vmatpush1.msra.mxu0 %v80_v30  ;;  %v136_v47 = vld [vmem:[#allocation5 + $0x240] sm:$0xff]  ;;  %v71_v48 = vld [vmem:[#allocation5 + $0x38] sm:$0xff]  ;;  %v70_v50 = vld [vmem:[#allocation5 + $0x30] sm:$0xff] }
  0x37   :  { %290 = vmatpush1.msra.mxu1 %v144_v31  ;;  %220 = vmatprep.subr.mxu0 %v79_v32  ;;  %v135_v49 = vld [vmem:[#allocation5 + $0x238] sm:$0xff]  ;;  %v134_v51 = vld [vmem:[#allocation5 + $0x230] sm:$0xff]  ;;  %v69_v52 = vld [vmem:[#allocation5 + $0x28] sm:$0xff] }
  0x38   :  { %291 = vmatprep.subr.mxu1 %v143_v33  ;;  %221 = vmatpush1.msra.mxu0 %v78_v34  ;;  %v133_v53 = vld [vmem:[#allocation5 + $0x228] sm:$0xff]  ;;  %v68_v54 = vld [vmem:[#allocation5 + $0x20] sm:$0xff]  ;;  %v67_v56 = vld [vmem:[#allocation5 + $0x18] sm:$0xff] }
  0x39   :  { %292 = vmatpush1.msra.mxu1 %v142_v35  ;;  %222 = vmatprep.subr.mxu0 %v77_v36  ;;  %v132_v55 = vld [vmem:[#allocation5 + $0x220] sm:$0xff]  ;;  %v131_v57 = vld [vmem:[#allocation5 + $0x218] sm:$0xff]  ;;  %v66_v58 = vld [vmem:[#allocation5 + $0x10] sm:$0xff] }
  0x3a   :  { %293 = vmatprep.subr.mxu1 %v141_v37  ;;  %223 = vmatpush1.msra.mxu0 %v76_v38  ;;  %v130_v59 = vld [vmem:[#allocation5 + $0x210] sm:$0xff]  ;;  %v65_v60 = vld [vmem:[#allocation5 + $0x8] sm:$0xff]  ;;  %v64_v62 = vld [vmem:[#allocation5] sm:$0xff] }
  0x3b   :  { %294 = vmatpush1.msra.mxu1 %v140_v39  ;;  %224 = vmatprep.subr.mxu0 %v75_v40  ;;  %v129_v61 = vld [vmem:[#allocation5 + $0x208] sm:$0xff]  ;;  %v128_v63 = vld [vmem:[#allocation5 + $0x200] sm:$0xff]  ;;  %v127_v0 = vld [vmem:[#allocation5 + $0x1f8] sm:$0xff] }
  0x3c   :  { %295 = vmatprep.subr.mxu1 %v139_v41  ;;  %225 = vmatpush1.msra.mxu0 %v74_v42  ;;  %v191_v1 = vld [vmem:[#allocation5 + $0x3f8] sm:$0xff]  ;;  %v126_v2 = vld [vmem:[#allocation5 + $0x1f0] sm:$0xff]  ;;  %v125_v4 = vld [vmem:[#allocation5 + $0x1e8] sm:$0xff] }
  0x3d   :  { %296 = vmatpush1.msra.mxu1 %v138_v43  ;;  %226 = vmatprep.subr.mxu0 %v73_v44  ;;  %v190_v3 = vld [vmem:[#allocation5 + $0x3f0] sm:$0xff]  ;;  %v189_v5 = vld [vmem:[#allocation5 + $0x3e8] sm:$0xff]  ;;  %v124_v6 = vld [vmem:[#allocation5 + $0x1e0] sm:$0xff] }
  0x3e   :  { %297 = vmatprep.subr.mxu1 %v137_v45  ;;  %227 = vmatpush1.msra.mxu0 %v72_v46  ;;  %v188_v7 = vld [vmem:[#allocation5 + $0x3e0] sm:$0xff]  ;;  %v123_v8 = vld [vmem:[#allocation5 + $0x1d8] sm:$0xff]  ;;  %v122_v10 = vld [vmem:[#allocation5 + $0x1d0] sm:$0xff] }
  0x3f   :  { %298 = vmatpush1.msra.mxu1 %v136_v47  ;;  %228 = vmatprep.subr.mxu0 %v71_v48  ;;  %v187_v9 = vld [vmem:[#allocation5 + $0x3d8] sm:$0xff]  ;;  %v186_v11 = vld [vmem:[#allocation5 + $0x3d0] sm:$0xff]  ;;  %v121_v12 = vld [vmem:[#allocation5 + $0x1c8] sm:$0xff] }
  0x40   :  { %299 = vmatprep.subr.mxu1 %v135_v49  ;;  %229 = vmatpush1.msra.mxu0 %v70_v50  ;;  %v185_v13 = vld [vmem:[#allocation5 + $0x3c8] sm:$0xff]  ;;  %v120_v14 = vld [vmem:[#allocation5 + $0x1c0] sm:$0xff]  ;;  %v119_v16 = vld [vmem:[#allocation5 + $0x1b8] sm:$0xff] }
  0x41   :  { %300 = vmatpush1.msra.mxu1 %v134_v51  ;;  %230 = vmatprep.subr.mxu0 %v69_v52  ;;  %v184_v15 = vld [vmem:[#allocation5 + $0x3c0] sm:$0xff]  ;;  %v183_v17 = vld [vmem:[#allocation5 + $0x3b8] sm:$0xff]  ;;  %v118_v18 = vld [vmem:[#allocation5 + $0x1b0] sm:$0xff] }
  0x42   :  { %301 = vmatprep.subr.mxu1 %v133_v53  ;;  %231 = vmatpush1.msra.mxu0 %v68_v54  ;;  %v182_v19 = vld [vmem:[#allocation5 + $0x3b0] sm:$0xff]  ;;  %v117_v20 = vld [vmem:[#allocation5 + $0x1a8] sm:$0xff]  ;;  %v116_v22 = vld [vmem:[#allocation5 + $0x1a0] sm:$0xff] }
  0x43   :  { %302 = vmatpush1.msra.mxu1 %v132_v55  ;;  %232 = vmatprep.subr.mxu0 %v67_v56  ;;  %v181_v21 = vld [vmem:[#allocation5 + $0x3a8] sm:$0xff]  ;;  %v180_v23 = vld [vmem:[#allocation5 + $0x3a0] sm:$0xff]  ;;  %v115_v24 = vld [vmem:[#allocation5 + $0x198] sm:$0xff] }
  0x44   :  { %303 = vmatprep.subr.mxu1 %v131_v57  ;;  %233 = vmatpush1.msra.mxu0 %v66_v58  ;;  %v179_v25 = vld [vmem:[#allocation5 + $0x398] sm:$0xff]  ;;  %v114_v26 = vld [vmem:[#allocation5 + $0x190] sm:$0xff]  ;;  %v113_v28 = vld [vmem:[#allocation5 + $0x188] sm:$0xff] }
  0x45   :  { %304 = vmatpush1.msra.mxu1 %v130_v59  ;;  %234 = vmatprep.subr.mxu0 %v65_v60  ;;  %v178_v27 = vld [vmem:[#allocation5 + $0x390] sm:$0xff]  ;;  %v177_v29 = vld [vmem:[#allocation5 + $0x388] sm:$0xff]  ;;  %v112_v30 = vld [vmem:[#allocation5 + $0x180] sm:$0xff] }
  0x46   :  { %305 = vmatprep.subr.mxu1 %v129_v61  ;;  %235 = vmatpush1.msra.mxu0 %v64_v62  ;;  %v176_v31 = vld [vmem:[#allocation5 + $0x380] sm:$0xff]  ;;  %v111_v32 = vld [vmem:[#allocation5 + $0x178] sm:$0xff]  ;;  %v110_v34 = vld [vmem:[#allocation5 + $0x170] sm:$0xff] }
  0x47   :  { %306 = vmatpush1.msra.mxu1 %v128_v63  ;;  %236 = vmatprep.subr.mxu0 %v127_v0  ;;  %v175_v33 = vld [vmem:[#allocation5 + $0x378] sm:$0xff]  ;;  %v174_v35 = vld [vmem:[#allocation5 + $0x370] sm:$0xff]  ;;  %v109_v36 = vld [vmem:[#allocation5 + $0x168] sm:$0xff] }
  0x48   :  { %307 = vmatprep.subr.mxu1 %v191_v1  ;;  %237 = vmatpush2.msra.mxu0 %v126_v2  ;;  %v173_v37 = vld [vmem:[#allocation5 + $0x368] sm:$0xff]  ;;  %v108_v38 = vld [vmem:[#allocation5 + $0x160] sm:$0xff]  ;;  %v107_v40 = vld [vmem:[#allocation5 + $0x158] sm:$0xff] }
  0x49   :  { %308 = vmatpush2.msra.mxu1 %v190_v3  ;;  %238 = vmatprep.subr.mxu0 %v125_v4  ;;  %v172_v39 = vld [vmem:[#allocation5 + $0x360] sm:$0xff]  ;;  %v171_v41 = vld [vmem:[#allocation5 + $0x358] sm:$0xff]  ;;  %v106_v42 = vld [vmem:[#allocation5 + $0x150] sm:$0xff] }
  0x4a   :  { %309 = vmatprep.subr.mxu1 %v189_v5  ;;  %239 = vmatpush2.msra.mxu0 %v124_v6  ;;  %v170_v43 = vld [vmem:[#allocation5 + $0x350] sm:$0xff]  ;;  %v105_v44 = vld [vmem:[#allocation5 + $0x148] sm:$0xff]  ;;  %v104_v46 = vld [vmem:[#allocation5 + $0x140] sm:$0xff] }
  0x4b   :  { %310 = vmatpush2.msra.mxu1 %v188_v7  ;;  %240 = vmatprep.subr.mxu0 %v123_v8  ;;  %v169_v45 = vld [vmem:[#allocation5 + $0x348] sm:$0xff]  ;;  %v168_v47 = vld [vmem:[#allocation5 + $0x340] sm:$0xff]  ;;  %v103_v48 = vld [vmem:[#allocation5 + $0x138] sm:$0xff] }
  0x4c   :  { %311 = vmatprep.subr.mxu1 %v187_v9  ;;  %241 = vmatpush2.msra.mxu0 %v122_v10  ;;  %v167_v49 = vld [vmem:[#allocation5 + $0x338] sm:$0xff]  ;;  %v102_v50 = vld [vmem:[#allocation5 + $0x130] sm:$0xff]  ;;  %v101_v52 = vld [vmem:[#allocation5 + $0x128] sm:$0xff] }
  0x4d   :  { %312 = vmatpush2.msra.mxu1 %v186_v11  ;;  %242 = vmatprep.subr.mxu0 %v121_v12  ;;  %v166_v51 = vld [vmem:[#allocation5 + $0x330] sm:$0xff]  ;;  %v165_v53 = vld [vmem:[#allocation5 + $0x328] sm:$0xff]  ;;  %v100_v54 = vld [vmem:[#allocation5 + $0x120] sm:$0xff] }
  0x4e   :  { %313 = vmatprep.subr.mxu1 %v185_v13  ;;  %243 = vmatpush2.msra.mxu0 %v120_v14  ;;  %v164_v55 = vld [vmem:[#allocation5 + $0x320] sm:$0xff]  ;;  %v99_v56 = vld [vmem:[#allocation5 + $0x118] sm:$0xff]  ;;  %v98_v58 = vld [vmem:[#allocation5 + $0x110] sm:$0xff] }
  0x4f   :  { %314 = vmatpush2.msra.mxu1 %v184_v15  ;;  %244 = vmatprep.subr.mxu0 %v119_v16  ;;  %v163_v57 = vld [vmem:[#allocation5 + $0x318] sm:$0xff]  ;;  %v162_v59 = vld [vmem:[#allocation5 + $0x310] sm:$0xff]  ;;  %v97_v60 = vld [vmem:[#allocation5 + $0x108] sm:$0xff] }
  0x50   :  { %315 = vmatprep.subr.mxu1 %v183_v17  ;;  %245 = vmatpush2.msra.mxu0 %v118_v18  ;;  %v161_v61 = vld [vmem:[#allocation5 + $0x308] sm:$0xff]  ;;  %v96_v62 = vld [vmem:[#allocation5 + $0x100] sm:$0xff]  ;;  %v63_v1 = vld [vmem:[#allocation2 + $0x18] sm:$0xff] }
  0x51   :  { %316 = vmatpush2.msra.mxu1 %v182_v19  ;;  %246 = vmatprep.subr.mxu0 %v117_v20  ;;  %v61_v63 = vld [vmem:[#allocation2 + $0x8] sm:$0xff]  ;;  %v160_v0 = vld [vmem:[#allocation5 + $0x300] sm:$0xff]  ;;  %v62_v3 = vld [vmem:[#allocation2 + $0x10] sm:$0xff] }
  0x52   :  { %317 = vmatprep.subr.mxu1 %v181_v21  ;;  %247 = vmatpush2.msra.mxu0 %v116_v22  ;;  %v60_v2 = vld [vmem:[#allocation2] sm:$0xff]  ;;  %v379_v4 = vld [vmem:[#allocation7 + $0xf8] sm:$0xff]  ;;  %v378_v6 = vld [vmem:[#allocation7 + $0xf0] sm:$0xff] }
  0x53   :  { %318 = vmatpush2.msra.mxu1 %v180_v23  ;;  %248 = vmatprep.subr.mxu0 %v115_v24  ;;  %v363_v5 = vld [vmem:[#allocation7 + $0x78] sm:$0xff]  ;;  %v362_v7 = vld [vmem:[#allocation7 + $0x70] sm:$0xff]  ;;  %v377_v8 = vld [vmem:[#allocation7 + $0xe8] sm:$0xff] }
  0x54   :  { %319 = vmatprep.subr.mxu1 %v179_v25  ;;  %249 = vmatpush2.msra.mxu0 %v114_v26  ;;  %v361_v9 = vld [vmem:[#allocation7 + $0x68] sm:$0xff]  ;;  %v376_v10 = vld [vmem:[#allocation7 + $0xe0] sm:$0xff]  ;;  %v375_v12 = vld [vmem:[#allocation7 + $0xd8] sm:$0xff] }
  0x55   :  { %320 = vmatpush2.msra.mxu1 %v178_v27  ;;  %250 = vmatprep.subr.mxu0 %v113_v28  ;;  %v360_v11 = vld [vmem:[#allocation7 + $0x60] sm:$0xff]  ;;  %v359_v13 = vld [vmem:[#allocation7 + $0x58] sm:$0xff]  ;;  %v374_v14 = vld [vmem:[#allocation7 + $0xd0] sm:$0xff] }
  0x56   :  { %321 = vmatprep.subr.mxu1 %v177_v29  ;;  %251 = vmatpush2.msra.mxu0 %v112_v30  ;;  %v358_v15 = vld [vmem:[#allocation7 + $0x50] sm:$0xff]  ;;  %v373_v16 = vld [vmem:[#allocation7 + $0xc8] sm:$0xff]  ;;  %v372_v18 = vld [vmem:[#allocation7 + $0xc0] sm:$0xff] }
  0x57   :  { %322 = vmatpush2.msra.mxu1 %v176_v31  ;;  %252 = vmatprep.subr.mxu0 %v111_v32  ;;  %v357_v17 = vld [vmem:[#allocation7 + $0x48] sm:$0xff]  ;;  %v356_v19 = vld [vmem:[#allocation7 + $0x40] sm:$0xff]  ;;  %v371_v20 = vld [vmem:[#allocation7 + $0xb8] sm:$0xff] }
  0x58   :  { %323 = vmatprep.subr.mxu1 %v175_v33  ;;  %253 = vmatpush2.msra.mxu0 %v110_v34  ;;  %v355_v21 = vld [vmem:[#allocation7 + $0x38] sm:$0xff]  ;;  %v370_v22 = vld [vmem:[#allocation7 + $0xb0] sm:$0xff]  ;;  %v369_v24 = vld [vmem:[#allocation7 + $0xa8] sm:$0xff] }
  0x59   :  { %324 = vmatpush2.msra.mxu1 %v174_v35  ;;  %254 = vmatprep.subr.mxu0 %v109_v36  ;;  %v354_v23 = vld [vmem:[#allocation7 + $0x30] sm:$0xff]  ;;  %v353_v25 = vld [vmem:[#allocation7 + $0x28] sm:$0xff]  ;;  %v368_v26 = vld [vmem:[#allocation7 + $0xa0] sm:$0xff]  ;;  %v194_v36 = vlaneseq }
  0x5a   :  { %325 = vmatprep.subr.mxu1 %v173_v37  ;;  %255 = vmatpush2.msra.mxu0 %v108_v38  ;;  %v352_v27 = vld [vmem:[#allocation7 + $0x20] sm:$0xff]  ;;  %v367_v28 = vld [vmem:[#allocation7 + $0x98] sm:$0xff]  ;;  %v366_v30 = vld [vmem:[#allocation7 + $0x90] sm:$0xff] }
  0x5b   :  { %326 = vmatpush2.msra.mxu1 %v172_v39  ;;  %256 = vmatprep.subr.mxu0 %v107_v40  ;;  %v351_v29 = vld [vmem:[#allocation7 + $0x18] sm:$0xff]  ;;  %v350_v31 = vld [vmem:[#allocation7 + $0x10] sm:$0xff]  ;;  %v365_v32 = vld [vmem:[#allocation7 + $0x88] sm:$0xff]  ;;  %v195_v37 = vshrl.u32 %v194_v36, 7 }
  0x5c   :  { %327 = vmatprep.subr.mxu1 %v171_v41  ;;  %257 = vmatpush2.msra.mxu0 %v106_v42  ;;  %v349_v33 = vld [vmem:[#allocation7 + $0x8] sm:$0xff]  ;;  %v364_v34 = vld [vmem:[#allocation7 + $0x80] sm:$0xff] }
  0x5d   :  { %328 = vmatpush2.msra.mxu1 %v170_v43  ;;  %258 = vmatprep.subr.mxu0 %v105_v44  ;;  %v348_v35 = vld [vmem:[#allocation7] sm:$0xff]  ;;  %v196_v38 = vsub.s32 0, %v195_v37  ;;  %v200_v40 = vsub.s32 1, %v195_v37 }
  0x5e   :  { %329 = vmatprep.subr.mxu1 %v169_v45  ;;  %259 = vmatpush2.msra.mxu0 %v104_v46  ;;  %v192_v39 = vld [vmem:[%s662_s2] sm:$0x3]  ;;  %s611_s2 = smov [#allocation8]  }
  0x5f   :  { %330 = vmatpush2.msra.mxu1 %v168_v47  ;;  %260 = vmatprep.subr.mxu0 %v103_v48  ;;  %v197_v41 = vrot.slane %v192_v39, %v196_v38  ;;  %v201_v42 = vrot.slane %v192_v39, %v200_v40  ;;  %s464_s13 = sshll.u32 %s611_s2, 4  ;;  %s465_s13 = int_to_ptr.vmem [resolvable:$true] %s464_s13 }
  0x60   :  { %331 = vmatprep.subr.mxu1 %v167_v49  ;;  %261 = vmatpush2.msra.mxu0 %v102_v50  ;;  %s578_s14 = scalar_lea.vmem %s465_s13, 128  ;;  %p583_p2 = scmp.lt.s32.totalorder %s465_s13, %s465_s13 }
  0x61   :  { %332 = vmatpush2.msra.mxu1 %v166_v51  ;;  %262 = vmatprep.subr.mxu0 %v101_v52  ;;  %p579_p1 = scmp.ne.s32.totalorder %s465_s13, %s578_s14  ;;  %p584_p3 = scmp.lt.s32.totalorder %s578_s14, %s578_s14 }
  0x62   :  { %333 = vmatprep.subr.mxu1 %v165_v53  ;;  %263 = vmatpush2.msra.mxu0 %v100_v54  ;;  %v474_v54 = vld [vmem:[%s664_s4] ss:$0 sm:$0xff] }
  0x63   :  { %334 = vmatpush2.msra.mxu1 %v164_v55  ;;  %264 = vmatprep.subr.mxu0 %v99_v56  ;;  %p585_p4 = por %p584_p3, %p583_p2 }
  0x64   :  { %335 = vmatprep.subr.mxu1 %v163_v57  ;;  %265 = vmatpush2.msra.mxu0 %v98_v58 }
  0x65   :  { %336 = vmatpush2.msra.mxu1 %v162_v59  ;;  %266 = vmatprep.subr.mxu0 %v97_v60  ;;  %p586_p5 = pnand %p585_p4, %p579_p1 }
  0x66   :  { %337 = vmatprep.subr.mxu1 %v161_v61  ;;  %267 = vmatpush2.msra.mxu0 %v96_v62 }
  0x67   :  { %268 = vmatprep.mubr.f32.mxu0 %v61_v63  ;;  %338 = vmatpush2.msra.mxu1 %v160_v0 }
  0x68   :  { %339 = vmatprep.mubr.f32.mxu1 %v63_v1  ;;  %269 = vmatmul.mubr.f32.vlgmr.msra.gmra.mxu0 %v60_v2 }
  0x69   :  { %340 = vmatmul.mubr.f32.vlgmr.msra.gmra.mxu1 %v62_v3  ;;  %475 = vmatprep.subr.mxu0 %v379_v4 }
  0x6a   :  { %476 = vmatpush3.msra.mxu0 %v363_v5 }
  0x6b   :  { %477 = vmatprep.subr.mxu0 %v378_v6 }
  0x6c   :  { %478 = vmatpush3.msra.mxu0 %v362_v7 }
  0x6d   :  { %479 = vmatprep.subr.mxu0 %v377_v8 }
  0x6e   :  { %480 = vmatpush3.msra.mxu0 %v361_v9 }
  0x6f   :  { %481 = vmatprep.subr.mxu0 %v376_v10 }
  0x70   :  { %482 = vmatpush3.msra.mxu0 %v360_v11 }
  0x71   :  { %483 = vmatprep.subr.mxu0 %v375_v12 }
  0x72   :  { %484 = vmatpush3.msra.mxu0 %v359_v13 }
  0x73   :  { %485 = vmatprep.subr.mxu0 %v374_v14 }
  0x74   :  { %486 = vmatpush3.msra.mxu0 %v358_v15 }
  0x75   :  { %487 = vmatprep.subr.mxu0 %v373_v16 }
  0x76   :  { %488 = vmatpush3.msra.mxu0 %v357_v17 }
  0x77   :  { %489 = vmatprep.subr.mxu0 %v372_v18 }
  0x78   :  { %490 = vmatpush3.msra.mxu0 %v356_v19 }
  0x79   :  { %491 = vmatprep.subr.mxu0 %v371_v20 }
  0x7a   :  { %492 = vmatpush3.msra.mxu0 %v355_v21 }
  0x7b   :  { %493 = vmatprep.subr.mxu0 %v370_v22 }
  0x7c   :  { %494 = vmatpush3.msra.mxu0 %v354_v23 }
  0x7d   :  { %495 = vmatprep.subr.mxu0 %v369_v24 }
  0x7e   :  { %496 = vmatpush3.msra.mxu0 %v353_v25 }
  0x7f   :  { %497 = vmatprep.subr.mxu0 %v368_v26 }
  0x80   :  { %498 = vmatpush3.msra.mxu0 %v352_v27 }
  0x81   :  { %499 = vmatprep.subr.mxu0 %v367_v28 }
  0x82   :  { %500 = vmatpush3.msra.mxu0 %v351_v29 }
  0x83   :  { %501 = vmatprep.subr.mxu0 %v366_v30 }
  0x84   :  { %502 = vmatpush3.msra.mxu0 %v350_v31 }
  0x85   :  { %503 = vmatprep.subr.mxu0 %v365_v32 }
  0x86   :  { %504 = vmatpush3.msra.mxu0 %v349_v33 }
  0x87   :  { %505 = vmatprep.subr.mxu0 %v364_v34 }
  0x88   :  { %506 = vmatpush3.msra.mxu0 %v348_v35 }
 0x128   :  { %v270_v43 = vpop.f32.mrf.mxu0 }
 0x129   :  { %v341_v44 = vpop.f32.mrf.mxu1  ;;  %v271_v45 = vadd.f32 %v270_v43, %v197_v41 }
 0x12a   :  { %v272_v46 = vpop.f32.mrf.mxu0 }
 0x12b   :  { %v273_v47 = vadd.f32 %v272_v46, %v201_v42  ;;  %v342_v48 = vadd.f32 %v341_v44, %v271_v45  ;;  %v343_v49 = vpop.f32.mrf.mxu1 }
 0x12d   :  { %v344_v50 = vadd.f32 %v343_v49, %v273_v47  ;;  %v346_v52 = vmax.f32 %v342_v48, 0.0 }
 0x12f   :  { %v347_v51 = vmax.f32 %v344_v50, 0.0 }
 0x131   :  { %451 = vmatprep.mubr.f32.mxu0 %v347_v51 }
 0x132   :  { %452 = vmatmul.mubr.f32.vlgmr.msra.gmra.mxu0 %v346_v52 }
 0x1f2   :  { %v507_v53 = vpop.f32.mrf.mxu0 }
 0x1f4   :  { %v508_v55 = vpop.f32.mrf.mxu0 }
 0x1f5   :  { %v509_v56 = vadd.f32 %v508_v55, %v507_v53 }
 0x1f7   :  { %v454_v57 = vadd.f32 %v509_v56, %v474_v54 }
 0x1f9   :  { %457 = vst [vmem:[#allocation8] sm:$0xff] %v454_v57 }
 0x1fa   :  { %589 = shalt.err (!%p586_p5)
}
 0x1fb   :  { %467 = dma.vmem_to_hbm [thread:$0]  %s465_s13, 128, %s665_s5, [#allocation4]  }
 0x1fc   :  { %602 = dma.done.wait [#allocation4], 128  }
 0x1fd   :  { %603 = vsyncadd [#allocation4], 4294967168 }
 0x1fe   :  { %471 = vsyncpa [#allocation3], 1 }
 0x1ff   :  { %472 = vsyncpa [#allocation6], 1 }
 0x200   :  { %473 = vsyncpa [#allocation4], 1 }

</bundles_post_ra>
